<compile_context>
chip_gen: v6e
topology: v6e:2x2x1
jax: 0.10.0
libtpu: 0.0.40
codegen_flags: <defaults>
</compile_context>

<pallas_src>
import numpy as np
import jax
import jax.numpy as jnp
from jax.experimental import pallas as pl
from jax.experimental.pallas import tpu as pltpu

# ----------------------------- hyperparameters ------------------------------
BETA_D = 19.9
BETA_MIN = 0.1
M_STEPS = 1000
EPSILON_T = 1e-5

LANE = 128
ROW_CAP = 128                         # rows per block: AI = R/4 flop/byte stays HBM-bound
X_TILE_BUDGET = 6 * 1024 * 1024       # ~6 MiB x tile -> 2*(in+out) ~ 24 MiB resident
VMEM_LIMIT_BYTES = 48 * 1024 * 1024   # > v5e 16 MiB scoped default, < v7x 64 MiB physical


def sigma_of_t(t):
    t = jnp.asarray(t, jnp.float32)
    return jnp.sqrt(jnp.exp(0.5 * BETA_D * t ** 2 + BETA_MIN * t) - 1.0)


def sigma_inv(sigma):
    sigma = jnp.asarray(sigma, jnp.float32)
    return (jnp.sqrt(BETA_MIN ** 2 + 2.0 * BETA_D * jnp.log(1.0 + sigma ** 2))
            - BETA_MIN) / BETA_D


# ------------------------------- Pallas kernel ------------------------------
def vp_precond_kernel(x_ref, w_ref, b_ref, o_ref):
    # x_ref: (R, T)  f32/bf16 spatial tile; rows = NB batch elements x C channels
    # w_ref: (R, R)  f32 block-diagonal effective 1x1-conv weight for this group
    # b_ref: (R, 1)  f32 effective bias
    # o_ref: (R, T)  f32 output tile
    x = x_ref[...].astype(jnp.float32)      # upcast when streaming bf16
    w = w_ref[...]
    R = w.shape[0]

    if R <= 8:
        # Tiny contraction: unrolled rank-1 FMAs on the VPU instead of feeding
        # a K<=8 matmul to the 256-wide MXU (memory-bound either way; avoids
        # MXU result-FIFO latency for nearly-empty passes).
        f = w[:, 0:1] * x[0:1, :]
        for r in range(1, R):
            f = f + w[:, r:r + 1] * x[r:r + 1, :]
    else:
        # f32 MXU matmul (f32 accumulate). Wasted block-diagonal flops are
        # free: AI = R/4 <= 32 flop/byte keeps the kernel HBM-bound.
        f = jnp.dot(w, x, preferred_element_type=jnp.float32)

    # D_x = x + W_eff @ x + b_eff     (c_skip = 1 already folded in)
    o_ref[...] = x + f + b_ref[...]


# ------------------------------ tile selection -------------------------------
def _choose_batch_group(N, C, sublane, row_cap=ROW_CAP):
    """NB (a divisor of N) such that R = NB*C is a multiple of `sublane`,
    preferring the largest R <= row_cap. Falls back to the smallest valid NB,
    or NB = N (block covers the full row dim, which is always layout-legal)."""
    valid = [nb for nb in range(1, N + 1)
             if N % nb == 0 and (nb * C) % sublane == 0]
    under = [nb for nb in valid if nb * C <= row_cap]
    if under:
        return max(under)
    if valid:
        return min(valid)
    return N


def _choose_spatial_tile(HW, R, elem_bytes, want_split,
                         budget_bytes=X_TILE_BUDGET):
    """Returns (HW_padded, T): HW padded up to a lane multiple, and the largest
    lane-multiple tile T dividing it with R*T*elem_bytes <= budget_bytes.
    If want_split, T is additionally capped at ~HW_padded/2 so the grid keeps
    >= 2 parallel steps (both v7x TensorCores stream)."""
    HW_p = -(-HW // LANE) * LANE
    t_max = max(LANE, (budget_bytes // max(R * elem_bytes, 1)) // LANE * LANE)
    t_max = min(t_max, HW_p)
    if want_split and HW_p >= 2 * LANE:
        t_max = min(t_max, max(LANE, (HW_p // 2) // LANE * LANE))
    n_units = HW_p // LANE
    T = LANE
    for t in range(t_max // LANE, 0, -1):
        if n_units % t == 0:
            T = t * LANE
            break
    return HW_p, T


# --------------------------------- wrapper -----------------------------------
def vp_precond_forward(x, sigma, W, b, time_w, *, stream_bf16=False):
    """x: (N, C, H, W); sigma: (N,); W: (2C, C); b, time_w: (2C, 1)."""
    x = x.astype(jnp.float32)
    sigma = sigma.astype(jnp.float32).reshape(-1)

    N, C, H, Wd = x.shape
    HW = H * Wd
    NC = N * C

    # Per-batch scalar coefficients (a handful of transcendentals over N).
    c_in = 1.0 / jnp.sqrt(sigma ** 2 + 1.0)
    c_out = -sigma
    c_noise = (M_STEPS - 1) * sigma_inv(sigma)

    # Only the first C output channels survive torch.split -> drop the rest,
    # then fold the per-batch scalars into small effective parameters.
    W1 = W[:C].astype(jnp.float32)                      # (C, C)
    b1 = b[:C].astype(jnp.float32)                      # (C, 1)
    tw1 = time_w[:C].astype(jnp.float32)                # (C, 1)
    W_eff = (c_in * c_out)[:, None, None] * W1[None]    # (N, C, C)
    b_eff = c_out[:, None, None] * (b1[None]
                                    + tw1[None] * c_noise[:, None, None])  # (N, C, 1)

    # --- blocking -------------------------------------------------------------
    in_dtype = jnp.bfloat16 if stream_bf16 else jnp.float32
    elem = 2 if stream_bf16 else 4
    sublane = 16 if stream_bf16 else 8                  # packed-dtype sublane tiling
    NB = _choose_batch_group(N, C, sublane)
    G = N // NB
    R = NB * C
    HW_p, T = _choose_spatial_tile(HW, R, elem, want_split=(G == 1))

    # Block-diagonal per-group weights: A[g] = diag(W_eff[g*NB], ..., W_eff[g*NB+NB-1]).
    eye = jnp.eye(NB, dtype=jnp.float32)
    A = jnp.einsum("ij,gicd->gicjd", eye,
                   W_eff.reshape(G, NB, C, C)).reshape(G, R, R)
    beff = b_eff.reshape(G, R, 1)

    x2 = x.reshape(NC, HW)
    if HW_p != HW:
        # TODO(synk): masked ragged last tile would avoid this extra HBM copy.
        x2 = jnp.pad(x2, ((0, 0), (0, HW_p - HW)))
    x2 = x2.astype(in_dtype)

    out = pl.pallas_call(
        vp_precond_kernel,
        out_shape=jax.ShapeDtypeStruct((NC, HW_p), jnp.float32),
        grid_spec=pltpu.PrefetchScalarGridSpec(
            num_scalar_prefetch=0,
            grid=(G, HW_p // T),            # spatial innermost: W/b fetched once per group
            in_specs=[
                pl.BlockSpec((R, T), lambda g, j: (g, j)),           # x tile (dense rows)
                pl.BlockSpec((None, R, R), lambda g, j: (g, 0, 0)),  # W_eff (block-diag, tiny)
                pl.BlockSpec((None, R, 1), lambda g, j: (g, 0, 0)),  # b_eff (tiny, per group)
            ],
            out_specs=pl.BlockSpec((R, T), lambda g, j: (g, j)),
        ),
        compiler_params=pltpu.CompilerParams(
            dimension_semantics=("parallel", "parallel"),  # shards over v7x's 2 TCs
            vmem_limit_bytes=VMEM_LIMIT_BYTES),
    )(x2, A, beff)

    if HW_p != HW:
        out = out[:, :HW]
    return out.reshape(N, C, H, Wd)


# ------------------------------ pure-JAX reference ---------------------------
def vp_precond_reference(x, sigma, W, b, time_w):
    x = x.astype(jnp.float32)
    sigma4 = sigma.astype(jnp.float32).reshape(-1, 1, 1, 1)
    c_in = 1.0 / jnp.sqrt(sigma4 ** 2 + 1.0)
    c_out = -sigma4
    c_noise = (M_STEPS - 1) * sigma_inv(sigma4).reshape(-1)   # (N,)

    N, C, H, Wd = x.shape
    h = (c_in * x).reshape(N, C, H * Wd)
    f = (jnp.einsum("oc,nch->noh", W, h)
         + b.reshape(1, 2 * C, 1)
         + time_w.reshape(1, 2 * C, 1) * c_noise.reshape(N, 1, 1))
    f = f.reshape(N, 2 * C, H, Wd)
    F_x = f[:, :C]
    return x + c_out * F_x


# ------------------------------------ main -----------------------------------
if __name__ == "__main__":
    def make_inputs(key, N, C, H, Wd):
        k_x, k_s, k_w, k_b, k_t = jax.random.split(key, 5)
        x = jax.random.normal(k_x, (N, C, H, Wd), dtype=jnp.float32)
        t = jax.random.uniform(k_s, (N,), minval=0.05, maxval=1.0)
        sigma = sigma_of_t(t)                       # valid VP sigma range
        W = 0.1 * jax.random.normal(k_w, (2 * C, C), dtype=jnp.float32)
        b = 0.05 * jax.random.normal(k_b, (2 * C, 1), dtype=jnp.float32)
        time_w = 0.001 * jax.random.normal(k_t, (2 * C, 1), dtype=jnp.float32)
        return x, sigma, W, b, time_w

    k1, k2 = jax.random.split(jax.random.PRNGKey(0))

    # (1) module-default-ish shapes (img_resolution=16, img_channels=4):
    #     R = 8 (full row dim), VPU contraction path, spatial grid split to (1, 2).
    x, sigma, W, b, time_w = make_inputs(k1, 2, 4, 16, 16)
    out = jax.block_until_ready(vp_precond_forward(x, sigma, W, b, time_w))
    ref = jax.block_until_ready(vp_precond_reference(x, sigma, W, b, time_w))
    assert out.shape == x.shape
    assert np.allclose(np.asarray(out), np.asarray(ref), rtol=1e-5, atol=1e-5), \
        "f32 path (small) mismatch vs reference"

    # (2) non-128-multiple spatial size + larger channel count:
    #     exercises lane padding/slicing, the R=32 MXU path and batch grouping.
    #     (slightly looser tol: MXU multi-pass f32 vs XLA einsum reassociation)
    x2, sigma2, W2, b2, tw2 = make_inputs(k2, 4, 8, 18, 18)
    out2 = jax.block_until_ready(vp_precond_forward(x2, sigma2, W2, b2, tw2))
    ref2 = jax.block_until_ready(vp_precond_reference(x2, sigma2, W2, b2, tw2))
    assert np.allclose(np.asarray(out2), np.asarray(ref2), rtol=1e-4, atol=1e-4), \
        "f32 path (MXU/padded) mismatch vs reference"

    # (3) optional bf16 input streaming (halves the dominant HBM read stream;
    #     biggest win on bandwidth-poor v5e). Compute and output stay f32.
    out_bf = jax.block_until_ready(
        vp_precond_forward(x, sigma, W, b, time_w, stream_bf16=True))
    assert np.allclose(np.asarray(out_bf), np.asarray(ref), rtol=5e-2, atol=8e-2), \
        "bf16-stream path mismatch vs reference"

    print("KERNEL_OK")
</pallas_src>

<mosaic_0001>
module attributes {stable_mosaic.version = 11 : i64} {
  func.func @vp_precond_kernel(%arg0: i32, %arg1: i32, %arg2: memref<8x128xf32, #tpu.memory_space<vmem>>, %arg3: memref<1x8x8xf32, #tpu.memory_space<vmem>>, %arg4: memref<1x8x1xf32, #tpu.memory_space<vmem>>, %arg5: memref<8x128xf32, #tpu.memory_space<vmem>>) attributes {dimension_semantics = [#tpu.dimension_semantics<parallel>, #tpu.dimension_semantics<parallel>], iteration_bounds = array<i64: 1, 2>, scalar_prefetch = 0 : i64, scratch_operands = 0 : i64, tpu.core_type = #tpu.core_type<tc>, window_params = [{transform_indices = @transform_0, window_bounds = array<i64: 8, 128>}, {transform_indices = @transform_1, window_bounds = array<i64: 1, 8, 8>}, {transform_indices = @transform_2, window_bounds = array<i64: 1, 8, 1>}, {transform_indices = @transform_3, window_bounds = array<i64: 8, 128>}]} {
    %c0 = arith.constant 0 : index
    %c0_0 = arith.constant 0 : index
    %0 = vector.load %arg2[%c0, %c0_0] : memref<8x128xf32, #tpu.memory_space<vmem>>, vector<8x128xf32>
    %c0_1 = arith.constant 0 : index
    %c0_2 = arith.constant 0 : index
    %c0_3 = arith.constant 0 : index
    %1 = vector.load %arg3[%c0_1, %c0_2, %c0_3] : memref<1x8x8xf32, #tpu.memory_space<vmem>>, vector<1x8x8xf32>
    %2 = vector.shape_cast %1 : vector<1x8x8xf32> to vector<8x8xf32>
    %3 = vector.extract_strided_slice %2 {offsets = [0, 0], sizes = [8, 1], strides = [1, 1]} : vector<8x8xf32> to vector<8x1xf32>
    %4 = vector.extract_strided_slice %0 {offsets = [0, 0], sizes = [1, 128], strides = [1, 1]} : vector<8x128xf32> to vector<1x128xf32>
    %5 = vector.broadcast %3 : vector<8x1xf32> to vector<8x128xf32>
    %6 = vector.broadcast %4 : vector<1x128xf32> to vector<8x128xf32>
    %7 = arith.mulf %5, %6 : vector<8x128xf32>
    %8 = vector.extract_strided_slice %2 {offsets = [0, 1], sizes = [8, 1], strides = [1, 1]} : vector<8x8xf32> to vector<8x1xf32>
    %9 = vector.extract_strided_slice %0 {offsets = [1, 0], sizes = [1, 128], strides = [1, 1]} : vector<8x128xf32> to vector<1x128xf32>
    %10 = vector.broadcast %8 : vector<8x1xf32> to vector<8x128xf32>
    %11 = vector.broadcast %9 : vector<1x128xf32> to vector<8x128xf32>
    %12 = arith.mulf %10, %11 : vector<8x128xf32>
    %13 = arith.addf %7, %12 : vector<8x128xf32>
    %14 = vector.extract_strided_slice %2 {offsets = [0, 2], sizes = [8, 1], strides = [1, 1]} : vector<8x8xf32> to vector<8x1xf32>
    %15 = vector.extract_strided_slice %0 {offsets = [2, 0], sizes = [1, 128], strides = [1, 1]} : vector<8x128xf32> to vector<1x128xf32>
    %16 = vector.broadcast %14 : vector<8x1xf32> to vector<8x128xf32>
    %17 = vector.broadcast %15 : vector<1x128xf32> to vector<8x128xf32>
    %18 = arith.mulf %16, %17 : vector<8x128xf32>
    %19 = arith.addf %13, %18 : vector<8x128xf32>
    %20 = vector.extract_strided_slice %2 {offsets = [0, 3], sizes = [8, 1], strides = [1, 1]} : vector<8x8xf32> to vector<8x1xf32>
    %21 = vector.extract_strided_slice %0 {offsets = [3, 0], sizes = [1, 128], strides = [1, 1]} : vector<8x128xf32> to vector<1x128xf32>
    %22 = vector.broadcast %20 : vector<8x1xf32> to vector<8x128xf32>
    %23 = vector.broadcast %21 : vector<1x128xf32> to vector<8x128xf32>
    %24 = arith.mulf %22, %23 : vector<8x128xf32>
    %25 = arith.addf %19, %24 : vector<8x128xf32>
    %26 = vector.extract_strided_slice %2 {offsets = [0, 4], sizes = [8, 1], strides = [1, 1]} : vector<8x8xf32> to vector<8x1xf32>
    %27 = vector.extract_strided_slice %0 {offsets = [4, 0], sizes = [1, 128], strides = [1, 1]} : vector<8x128xf32> to vector<1x128xf32>
    %28 = vector.broadcast %26 : vector<8x1xf32> to vector<8x128xf32>
    %29 = vector.broadcast %27 : vector<1x128xf32> to vector<8x128xf32>
    %30 = arith.mulf %28, %29 : vector<8x128xf32>
    %31 = arith.addf %25, %30 : vector<8x128xf32>
    %32 = vector.extract_strided_slice %2 {offsets = [0, 5], sizes = [8, 1], strides = [1, 1]} : vector<8x8xf32> to vector<8x1xf32>
    %33 = vector.extract_strided_slice %0 {offsets = [5, 0], sizes = [1, 128], strides = [1, 1]} : vector<8x128xf32> to vector<1x128xf32>
    %34 = vector.broadcast %32 : vector<8x1xf32> to vector<8x128xf32>
    %35 = vector.broadcast %33 : vector<1x128xf32> to vector<8x128xf32>
    %36 = arith.mulf %34, %35 : vector<8x128xf32>
    %37 = arith.addf %31, %36 : vector<8x128xf32>
    %38 = vector.extract_strided_slice %2 {offsets = [0, 6], sizes = [8, 1], strides = [1, 1]} : vector<8x8xf32> to vector<8x1xf32>
    %39 = vector.extract_strided_slice %0 {offsets = [6, 0], sizes = [1, 128], strides = [1, 1]} : vector<8x128xf32> to vector<1x128xf32>
    %40 = vector.broadcast %38 : vector<8x1xf32> to vector<8x128xf32>
    %41 = vector.broadcast %39 : vector<1x128xf32> to vector<8x128xf32>
    %42 = arith.mulf %40, %41 : vector<8x128xf32>
    %43 = arith.addf %37, %42 : vector<8x128xf32>
    %44 = vector.extract_strided_slice %2 {offsets = [0, 7], sizes = [8, 1], strides = [1, 1]} : vector<8x8xf32> to vector<8x1xf32>
    %45 = vector.extract_strided_slice %0 {offsets = [7, 0], sizes = [1, 128], strides = [1, 1]} : vector<8x128xf32> to vector<1x128xf32>
    %46 = vector.broadcast %44 : vector<8x1xf32> to vector<8x128xf32>
    %47 = vector.broadcast %45 : vector<1x128xf32> to vector<8x128xf32>
    %48 = arith.mulf %46, %47 : vector<8x128xf32>
    %49 = arith.addf %43, %48 : vector<8x128xf32>
    %50 = arith.addf %0, %49 : vector<8x128xf32>
    %c0_4 = arith.constant 0 : index
    %c0_5 = arith.constant 0 : index
    %c0_6 = arith.constant 0 : index
    %51 = vector.load %arg4[%c0_4, %c0_5, %c0_6] : memref<1x8x1xf32, #tpu.memory_space<vmem>>, vector<1x8x1xf32>
    %52 = vector.shape_cast %51 : vector<1x8x1xf32> to vector<8x1xf32>
    %53 = vector.broadcast %52 : vector<8x1xf32> to vector<8x128xf32>
    %54 = arith.addf %50, %53 : vector<8x128xf32>
    %c0_7 = arith.constant 0 : index
    %c0_8 = arith.constant 0 : index
    %55 = vector.load %arg5[%c0_7, %c0_8] : memref<8x128xf32, #tpu.memory_space<vmem>>, vector<8x128xf32>
    tpu.vector_store %arg5[%c0_7, %c0_8], %54 {strides = array<i32>} : memref<8x128xf32, #tpu.memory_space<vmem>>, vector<8x128xf32>,
    return
  }
  func.func @transform_0(%arg0: i32, %arg1: i32) -> (i32, i32) {
    %c0_i32 = arith.constant 0 : i32
    return %arg0, %arg1 : i32, i32
  }
  func.func @transform_1(%arg0: i32, %arg1: i32) -> (i32, i32, i32) {
    %c0_i32 = arith.constant 0 : i32
    %c0_i32_0 = arith.constant 0 : i32
    %c0_i32_1 = arith.constant 0 : i32
    return %arg0, %c0_i32, %c0_i32_0 : i32, i32, i32
  }
  func.func @transform_2(%arg0: i32, %arg1: i32) -> (i32, i32, i32) {
    %c0_i32 = arith.constant 0 : i32
    %c0_i32_0 = arith.constant 0 : i32
    %c0_i32_1 = arith.constant 0 : i32
    return %arg0, %c0_i32, %c0_i32_0 : i32, i32, i32
  }
  func.func @transform_3(%arg0: i32, %arg1: i32) -> (i32, i32) {
    %c0_i32 = arith.constant 0 : i32
    return %arg0, %arg1 : i32, i32
  }
}

</mosaic_0001>

<bundles_post_ra>
// kernel: tpu_custom_call.1
= control target key start
LH: loop header
LB: loop body
LE: loop exit
PB: predicated region body
PF: predicated region fallthrough
CT: control target
= control target key end

     0   :  { %8 = vsyncpa [#allocation3], 0  ;;  %s838_s0 = inlined_call_operand.hbm [shape: f32[8,256], index: 0, kind: input, shape index: {}]   ;;  %s839_s1 = inlined_call_operand.vmem [shape: f32[1,8,8], index: 1, kind: input, shape index: {}]   ;;  %s840_s2 = inlined_call_operand.vmem [shape: f32[1,8,1], index: 2, kind: input, shape index: {}]   ;;  %s841_s3 = inlined_call_operand.hbm [shape: f32[8,256], index: 3, kind: output, shape index: {}]  }
   0x1   :  { %10 = vsyncpa [#allocation3 + $0x1], 0 }
   0x2   :  { %11 = vsyncpa [#allocation4], 0 }
   0x3   :  { %13 = vsyncpa [#allocation4 + $0x1], 0  ;;  %s691_s12 = smov 0   ;;  %s693_s13 = smov 0  }
   0x4   :  { %s695_s14 = smov 0   ;;  %s697_s15 = smov 0  }
   0x5   :  { %s699_s16 = smov 0   ;;  %s701_s17 = smov 0  }
   0x6 LB: > { %s457_s18 = sadd.s32 4294967295, %s659_s17   ;;  %s458_s19 = sadd.s32 4294967294, %s659_s17   ;;  %s659_s17 = sphi %s701_s17, %s19_s17   ;;  %s655_s16 = sphi %s699_s16, %s853_s16   ;;  %s651_s15 = sphi %s697_s15, %s852_s15   ;;  %s647_s14 = sphi %s695_s14, %s851_s14   ;;  %s643_s13 = sphi %s693_s13, %s850_s13   ;;  %s639_s12 = sphi %s691_s12, %s849_s12  }
   0x7   : > { %s28_s20 = sadd.s32 1, %s655_s16  ;;  %s40_s21 = sadd.s32 1, %s647_s14 }
   0x8   : > { %p29_p0 = scmp.ge.s32.totalorder %s28_s20, 2  ;;  %p47_p1 = scmp.ne.s32.totalorder %s647_s14, %s643_s13 }
   0x9   : > { %p48_p2 = scmp.eq.s32.totalorder %s659_s17, 0  ;;  %p53_p3 = scmp.ne.s32.totalorder %s643_s13, %s639_s12 }
   0xa   : > { %s855_s20 = smov (%p29_p0, %s28_s20), 0  ;;  %p54_p5 = scmp.eq.s32.totalorder %s457_s18, 0 }
   0xb   : > { %p732_p4 = por %p48_p2, %p47_p1  ;;  %s36_s23 = ssub.s32 %s655_s16, %s855_s20 }
   0xc   : > { %p131_p6 = scmp.eq.s32.totalorder %s457_s18, 1  ;;  %p38_p7 = scmp.eq.s32.totalorder %s36_s23, 0 }
   0xd   : > { %p738_p8 = por %p54_p5, %p53_p3  ;;  %p137_p10 = scmp.eq.s32.totalorder %s458_s19, 1 }
   0xe   : > { %p742_p9 = por %p131_p6, %p47_p1  ;;  %p484_p13 = scmp.lt.s32.totalorder %s659_s17, 2 }
   0xf   : > { %s747_s26 = scalar_select %p38_p7, %s647_s14, %s40_s21  }
  0x10   : > { %p749_p11 = por %p137_p10, %p53_p3  ;;  %s171_s28 = sand.u32 1, %s647_s14  }
  0x11   : > { %s463_s29 = sshll.u32 %s171_s28, 3  ;;  %s464_s30 = sshll.u32 %s655_s16, 7 }
  0x12   : > { %s845_s27 = scalar_select %p749_p11, 1, 0 }
  0x13   : > { %s182_s6 = scalar_lea.hbm %s838_s0, %s464_s30  ;;  %s175_s7 = scalar_lea.vmem [#allocation2], %s463_s29 }
  0x14   : > { %s184_s8 = sshll.u32 %s175_s7, 4  ;;  %p762_p0 = pnand %p484_p13, %p732_p4  ;;  %s185_s8 = int_to_ptr.vmem [resolvable:$true] %s184_s8 }
  0x15   : > { %p465_p1 = scmp.ge.s32.totalorder %s659_s17, 1  ;;  %p189_p2 = scmp.lt.s32.totalorder %s659_s17, 3 }
  0x16   : > { %s172_s10 = scalar_lea.sflag [#allocation3], %s171_s28  ;;  %p553_p3 = pneg %p762_p0 }
  0x17   : > { %s564_s11 = scalar_lea.vmem %s185_s8, 128  ;;  %s661_s18 = smov [#allocation2]  }
  0x18   : > { %p565_p5 = scmp.ne.s32.totalorder %s185_s8, %s564_s11  ;;  %s569_s19 = sshll.u32 %s661_s18, 4  ;;  %s570_s19 = int_to_ptr.vmem [resolvable:$false] %s569_s19 }
  0x19   : > { %s571_s21 = scalar_lea.vmem %s570_s19, 256  ;;  %p572_p10 = scmp.lt.s32.totalorder %s185_s8, %s570_s19 }
  0x1a   : > { %p567_p6 = pnand %p565_p5, %p553_p3  ;;  %p573_p12 = scmp.lt.s32.totalorder %s571_s21, %s564_s11 }
  0x1c   : > { %p568_p7 = pneg %p567_p6  ;;  %p574_p4 = por %p573_p12, %p572_p10 }
  0x1e   : > { %p575_p13 = pnand %p574_p4, %p568_p7 }
  0x20   : > { %578 = shalt.err (!%p575_p13)
}
  0x21   : > { %479 = dma.hbm_to_vmem [thread:$0]  (!%p762_p0), %s182_s6, 128, %s185_s8, %s172_s10  }
  0x22   : > { %p190_p11 = pnand %p465_p1, %p189_p2 }
  0x23   : > { %s777_s22 = sand.u32 (!%p190_p11), 1, %s643_s13  }
  0x24   : > { %193 = sbr.rel (%p190_p11) target bundleno = 209 (0xd1), region = 32  ;;  %s466_s23 = sshll.u32 (!%p190_p11), %s777_s22, 3 }
  0x25   : > { %s196_s28 = scalar_lea.sflag (!%p190_p11), [#allocation3], %s777_s22  ;;  %s783_s29 = scalar_lea.vmem (!%p190_p11), [#allocation2], %s466_s23 }
  0x29   : > { %630 = dma.done.wait (%p738_p8), %s196_s28, 128  }
  0x2a   : > { %632 = vsyncadd (%p738_p8), %s196_s28, 4294967168  ;;  %v662_v0 = vmov 2   ;;  %v663_v1 = vmov 0   ;;  %v239_v2 = vld [vmem:[%s839_s1] sm:$0xff]  ;;  %v664_v3 = vmov 3   ;;  %v665_v4 = vmov 1  }
  0x2b   : > { %544 = vset.pattern.permute.xlu1 %v662_v0  ;;  %542 = vset.pattern.permute.xlu0 %v663_v1  ;;  %v666_v5 = vmov 4   ;;  %v667_v6 = vmov 5   ;;  %v321_v7 = vld [vmem:[%s840_s2] sm:$0xff]  ;;  %v668_v8 = vmov 6   ;;  %v669_v9 = vmov 7   ;;  %s469_s6 = sshll.u32 %s651_s15, 7 }
  0x2c   : > { %261 = vperm.xlu1 %544, %v239_v2   ;;  %242 = vperm.xlu0 %542, %v239_v2   ;;  %v245_v10 = vlaneseq  ;;  %v238_v17 = vld [vmem:[%s783_s29] sm:$0xff]  ;;  %s229_s7 = scalar_lea.vmem [#allocation5], %s466_s23  ;;  %s343_s11 = scalar_lea.hbm %s841_s3, %s469_s6 }
  0x2d   : > { %s345_s8 = sshll.u32 %s229_s7, 4  ;;  %s330_s18 = scalar_lea.sflag [#allocation4], %s777_s22  ;;  %s346_s8 = int_to_ptr.vmem [resolvable:$true] %s345_s8 }
  0x2e   : > { %v246_v11 = vshrl.u32 %v245_v10, 7  ;;  %s579_s19 = scalar_lea.vmem %s346_s8, 128  ;;  %s670_s21 = smov [#allocation5]  }
  0x2f   : > { %p580_p8 = scmp.ne.s32.totalorder %s346_s8, %s579_s19  ;;  %s583_s28 = sshll.u32 %s670_s21, 4  ;;  %s584_s28 = int_to_ptr.vmem [resolvable:$false] %s583_s28 }
  0x30   : > { %545 = vset.pattern.permute.xlu1 %v664_v3  ;;  %543 = vset.pattern.permute.xlu0 %v665_v4  ;;  %v247_v12 = vsub.s32 0, %v246_v11  ;;  %v256_v13 = vsub.s32 1, %v246_v11  ;;  %v266_v14 = vsub.s32 2, %v246_v11  ;;  %v276_v19 = vsub.s32 3, %v246_v11  ;;  %s585_s15 = scalar_lea.vmem %s584_s28, 256  ;;  %p586_p0 = scmp.lt.s32.totalorder %s346_s8, %s584_s28 }
  0x31   : > { %271 = vperm.xlu1 %545, %v239_v2   ;;  %251 = vperm.xlu0 %543, %v239_v2   ;;  %v286_v21 = vsub.s32 4, %v246_v11  ;;  %v296_v25 = vsub.s32 5, %v246_v11  ;;  %v306_v33 = vsub.s32 6, %v246_v11  ;;  %v316_v42 = vsub.s32 7, %v246_v11  ;;  %p581_p11 = pnand %p580_p8, %p742_p9  ;;  %p587_p1 = scmp.lt.s32.totalorder %s585_s15, %s579_s19 }
  0x32   : > { %v248_v18 = vrot.slane %v238_v17, %v247_v12  ;;  %v257_v20 = vrot.slane %v238_v17, %v256_v13  ;;  %v267_v22 = vrot.slane %v238_v17, %v266_v14  ;;  %v277_v27 = vrot.slane %v238_v17, %v276_v19 }
  0x33   : > { %v287_v29 = vrot.slane %v238_v17, %v286_v21  ;;  %v297_v32 = vrot.slane %v238_v17, %v296_v25  ;;  %v307_v41 = vrot.slane %v238_v17, %v306_v33  ;;  %v317_v47 = vrot.slane %v238_v17, %v316_v42  ;;  %p582_p12 = pneg %p581_p11  ;;  %p588_p2 = por %p587_p1, %p586_p0 }
  0x35   : > { %546 = vset.pattern.permute.xlu1 %v666_v5  ;;  %547 = vset.pattern.permute.xlu0 %v667_v6  ;;  %p589_p3 = pnand %p588_p2, %p582_p12 }
  0x36   : > { %281 = vperm.xlu1 %546, %v239_v2   ;;  %291 = vperm.xlu0 %547, %v239_v2  }
  0x3a   : > { %548 = vset.pattern.permute.xlu1 %v668_v8  ;;  %550 = vset.pattern.permute.xlu0 %v663_v1 }
  0x3b   : > { %301 = vperm.xlu1 %548, %v239_v2   ;;  %324 = vperm.xlu0 %550, %v321_v7  }
  0x3f   : > { %549 = vset.pattern.permute.xlu1 %v669_v9 }
  0x40   : > { %311 = vperm.xlu1 %549, %v239_v2  }
  0xa7   : > { %v262_v15 = vpop.permute.xlu1 %261  ;;  %v243_v16 = vpop.permute.xlu0 %242 }
  0xa8   : > { %v249_v26 = vmul.f32 %v248_v18, %v243_v16  ;;  %v268_v30 = vmul.f32 %v267_v22, %v262_v15 }
  0xac   : > { %v272_v23 = vpop.permute.xlu1 %271  ;;  %v252_v24 = vpop.permute.xlu0 %251 }
  0xad   : > { %v258_v28 = vmul.f32 %v257_v20, %v252_v24  ;;  %v278_v34 = vmul.f32 %v277_v27, %v272_v23 }
  0xaf   : > { %v259_v31 = vadd.f32 %v258_v28, %v249_v26 }
  0xb1   : > { %v269_v35 = vadd.f32 %v268_v30, %v259_v31  ;;  %v282_v36 = vpop.permute.xlu1 %281  ;;  %v292_v37 = vpop.permute.xlu0 %291 }
  0xb2   : > { %v288_v38 = vmul.f32 %v287_v29, %v282_v36  ;;  %v298_v40 = vmul.f32 %v297_v32, %v292_v37 }
  0xb3   : > { %v279_v39 = vadd.f32 %v278_v34, %v269_v35 }
  0xb5   : > { %v289_v43 = vadd.f32 %v288_v38, %v279_v39 }
  0xb6   : > { %v302_v44 = vpop.permute.xlu1 %301  ;;  %v325_v52 = vpop.permute.xlu0 %324 }
  0xb7   : > { %v299_v45 = vadd.f32 %v298_v40, %v289_v43  ;;  %v308_v46 = vmul.f32 %v307_v41, %v302_v44 }
  0xb9   : > { %v309_v49 = vadd.f32 %v308_v46, %v299_v45 }
  0xbb   : > { %v312_v48 = vpop.permute.xlu1 %311 }
  0xbc   : > { %v318_v50 = vmul.f32 %v317_v47, %v312_v48 }
  0xbe   : > { %v319_v51 = vadd.f32 %v318_v50, %v309_v49 }
  0xc0   : > { %v320_v53 = vadd.f32 %v319_v51, %v238_v17 }
  0xc2   : > { %v327_v54 = vadd.f32 %v325_v52, %v320_v53 }
  0xc4   : > { %328 = vst [vmem:[%s229_s7] sm:$0xff] %v327_v54 }
  0xc5   : > { %592 = shalt.err (!%p589_p3)
}
  0xc6   : > { %s593_s23 = scalar_lea.hbm %s343_s11, 128  ;;  %s597_s30 = scalar_lea.hbm %s841_s3, 256 }
  0xc7   : > { %p594_p5 = scmp.ne.s32.totalorder %s343_s11, %s593_s23  ;;  %p598_p10 = scmp.lt.s32.totalorder %s343_s11, %s841_s3 }
  0xc8   : > { %p599_p4 = scmp.lt.s32.totalorder %s597_s30, %s593_s23 }
  0xc9   : > { %p595_p6 = pnand %p594_p5, %p742_p9 }
  0xca   : > { %p600_p13 = por %p599_p4, %p598_p10 }
  0xcb   : > { %p596_p7 = pneg %p595_p6 }
  0xcd   : > { %p601_p8 = pnand %p600_p13, %p596_p7 }
  0xcf   : > { %604 = shalt.err (!%p601_p8)
}
  0xd0   : > { %474 = dma.vmem_to_hbm [thread:$0]  (%p742_p9), %s346_s8, 128, %s343_s11, %s330_s18  }
  0xd1 PF: > { %s357_s5 = sand.u32 1, %s639_s12   ;;  %p847_p11 = scmp.ne.s32.totalorder %s845_s27, 0 }
  0xd2   : > { %p848_p12 = scmp.ge.s32.totalorder %s659_s17, 2  ;;  %s358_s6 = scalar_lea.sflag [#allocation4], %s357_s5 }
  0xd4   : > { %p481_p0 = pnand %p848_p12, %p847_p11 }
  0xd6   : > { %p482_p1 = pneg %p481_p0 }
  0xd8   : > { %634 = dma.done.wait (%p482_p1), %s358_s6, 128  }
  0xd9   : > { %636 = vsyncadd (%p482_p1), %s358_s6, 4294967168  ;;  %s19_s17 = sadd.s32 1, %s659_s17   ;;  %s849_s12 = smov %s643_s13 }
  0xda   : > { %p16_p2 = scmp.ge.s32.totalorder %s19_s17, 4   ;;  %s850_s13 = smov %s647_s14 }
  0xdb   : > { %s851_s14 = smov %s747_s26  ;;  %s852_s15 = smov %s655_s16 }
  0xdc   : > { %s853_s16 = smov %s855_s20  ;;  %18 = sbr.rel (!%p16_p2) target bundleno = 6 (0x6), region = 83 }
  0xe1   :  { %363 = vsyncpa [#allocation3], 1 }
  0xe2   :  { %365 = vsyncpa [#allocation3 + $0x1], 1 }
  0xe3   :  { %366 = vsyncpa [#allocation4], 1 }
  0xe4   :  { %368 = vsyncpa [#allocation4 + $0x1], 1 }

</bundles_post_ra>
